<compile_context>
chip_gen: v6e
topology: v6e:2x2x1
jax: 0.10.0
libtpu: 0.0.40
codegen_flags: <defaults>
</compile_context>

<pallas_src>
import functools

import numpy as np
import jax
import jax.numpy as jnp
from jax.experimental import pallas as pl
from jax.experimental.pallas import tpu as pltpu


def _round_up(x, m):
    return (x + m - 1) // m * m


def _vmem_limit_bytes():
    # Scoped-VMEM limit gated by generation: v7x has 64 MiB physical VMEM (keep <= ~48 MiB),
    # v5e/v6e have 128 MiB (allow more headroom).  Fallback is conservative.
    try:
        cap = pltpu.get_tpu_info().vmem_capacity_bytes
    except Exception:
        cap = 64 * 1024 * 1024
    return int(min(cap * 3 // 4, 96 * 1024 * 1024))


# ----------------------------------------------------------------------------
# Pallas kernel: fused  LeakyReLU( Wt @ x + bias )  in channel-first layout.
#   w_ref : (Cout, Cin)  bf16 (BN scale pre-folded into its rows)
#   b_ref : (Cout, 1)    f32
#   x_ref : (1, Cin, TS) f32 tile -> cast to bf16 in-kernel (free VPU slots)
#   o_ref : (1, Cout, TS) tile, lane-dense spatial axis
# Single K step (Cin is a single block): no accumulator, no pl.when phases.
# ----------------------------------------------------------------------------
def _conv1x1_bn_lrelu_kernel(w_ref, b_ref, x_ref, o_ref):
    x = x_ref[0].astype(jnp.bfloat16)                                   # (Cin, TS)
    y = jnp.dot(w_ref[...], x, preferred_element_type=jnp.float32)      # (Cout, TS) f32
    y = y + b_ref[...]                                                  # f32 epilogue
    o_ref[0] = jnp.where(y >= 0.0, y, 0.1 * y).astype(o_ref.dtype)


def _pick_spatial_tile(spatial, batch):
    """Lane tile over flattened H*W: multiple of 128 or the full spatial extent."""
    ts = spatial if spatial <= 1024 else 1024
    # v7x megacore: keep >= 2 parallel grid blocks even at batch == 1.
    if batch * pl.cdiv(spatial, ts) < 2 and spatial >= 256:
        ts = _round_up(pl.cdiv(spatial, 2), 128)
    return ts


def fused_conv1x1_bn_lrelu_nchw(x3, w_t, bias2, out_dtype=jnp.float32):
    """x3: (N, Cin, S) f32; w_t: (Cout, Cin) bf16; bias2: (Cout, 1) f32.
    Returns (N, Cout, S) = LeakyReLU_0.1(w_t @ x3[n] + bias2) per image."""
    n, cin, spatial = x3.shape
    cout = w_t.shape[0]

    ts = _pick_spatial_tile(spatial, n)
    grid = (n, pl.cdiv(spatial, ts))

    cost = pl.CostEstimate(
        flops=2 * n * cout * cin * spatial,
        transcendentals=0,
        bytes_accessed=(n * cin * spatial * 4 + cout * cin * 2 + cout * 4
                        + n * cout * spatial * np.dtype(out_dtype).itemsize),
    )

    return pl.pallas_call(
        _conv1x1_bn_lrelu_kernel,
        out_shape=jax.ShapeDtypeStruct((n, cout, spatial), out_dtype),
        grid_spec=pltpu.PrefetchScalarGridSpec(
            num_scalar_prefetch=0,
            grid=grid,
            in_specs=[
                pl.BlockSpec((cout, cin), lambda b, s: (0, 0)),   # weights: fetched once
                pl.BlockSpec((cout, 1), lambda b, s: (0, 0)),     # bias: fetched once
                pl.BlockSpec((1, cin, ts), lambda b, s: (b, 0, s)),
            ],
            out_specs=pl.BlockSpec((1, cout, ts), lambda b, s: (b, 0, s)),
        ),
        compiler_params=pltpu.CompilerParams(
            dimension_semantics=("parallel", "parallel"),
            vmem_limit_bytes=_vmem_limit_bytes(),
        ),
        cost_estimate=cost,
    )(w_t, bias2, x3)


# ----------------------------------------------------------------------------
# UpSample module: params + forward
# ----------------------------------------------------------------------------
def make_upsample_params(key, in_channels):
    """CBL(in_channels, in_channels // 2, 1) with BN folded: the per-channel scale is folded
    into the conv-weight rows (stored bf16, the MXU operand), leaving a +bias f32 epilogue."""
    out_channels = in_channels // 2
    kw, kg, kb, km, kv = jax.random.split(key, 5)
    w = jax.random.normal(kw, (out_channels, in_channels), jnp.float32) / np.sqrt(in_channels)
    gamma = 1.0 + 0.05 * jax.random.normal(kg, (out_channels,), jnp.float32)
    beta = 0.05 * jax.random.normal(kb, (out_channels,), jnp.float32)
    mean = 0.05 * jax.random.normal(km, (out_channels,), jnp.float32)
    var = 1.0 + 0.05 * jax.random.uniform(kv, (out_channels,), jnp.float32)
    eps = 1e-5
    scale = gamma / jnp.sqrt(var + eps)                       # (Cout,)
    bias = beta - mean * scale                                # (Cout,)
    w_folded = w * scale[:, None]
    return {
        'w_t': w_folded.astype(jnp.bfloat16),                 # (Cout, Cin) MXU operand
        'bias': bias.reshape(out_channels, 1).astype(jnp.float32),
    }


def _nearest_interpolate_nchw(y, out_h, out_w):
    """F.interpolate(mode='nearest') on an NCHW tensor.
    Index rule src = floor(dst * in / out): matches PyTorch's default 'nearest'
    (not 'nearest-exact')."""
    n, c, h, w = y.shape
    if out_h % h == 0 and out_w % w == 0:
        # Integer scale factor (YOLOv3's 2x case): pure broadcast + reshape, no gather.
        sh, sw = out_h // h, out_w // w
        y = jnp.broadcast_to(y[:, :, :, None, :, None], (n, c, h, sh, w, sw))
        return y.reshape(n, c, out_h, out_w)
    rows = (jnp.arange(out_h) * h) // out_h
    cols = (jnp.arange(out_w) * w) // out_w
    return y[:, :, rows[:, None], cols[None, :]]              # single combined gather


def upsample_forward(params, x_nchw, output_size, out_dtype=jnp.float32):
    n, cin, h, w = x_nchw.shape
    out_h, out_w = output_size
    cout = params['w_t'].shape[0]

    x3 = x_nchw.reshape(n, cin, h * w)                        # free row-major reshape
    y3 = fused_conv1x1_bn_lrelu_nchw(x3, params['w_t'], params['bias'], out_dtype)
    y = y3.reshape(n, cout, h, w)                             # free row-major reshape
    return _nearest_interpolate_nchw(y, out_h, out_w)


# ----------------------------------------------------------------------------
# Pure-JAX f32 reference (same bf16-rounded weights; only the in-kernel bf16 cast
# of x and the MXU rounding differ -> relative-tolerance check).
# ----------------------------------------------------------------------------
def upsample_reference(params, x_nchw, output_size):
    w_t = params['w_t'].astype(jnp.float32)
    b = params['bias'].astype(jnp.float32)[:, 0]
    y = jnp.einsum('oc,nchw->nohw', w_t, x_nchw.astype(jnp.float32))
    y = y + b[None, :, None, None]
    y = jnp.where(y >= 0.0, y, 0.1 * y)
    return _nearest_interpolate_nchw(y, *output_size)


if __name__ == "__main__":
    key = jax.random.PRNGKey(0)
    pkey, xkey = jax.random.split(key)

    in_channels = 64                      # UpSample(64) -> 32 output channels
    batch, h, w = 2, 16, 16
    output_size = (32, 32)                # 2x nearest upsample (YOLOv3 usage)

    params = make_upsample_params(pkey, in_channels)
    x = jax.random.normal(xkey, (batch, in_channels, h, w), jnp.float32)

    fwd = jax.jit(functools.partial(upsample_forward, output_size=output_size))
    y = fwd(params, x)
    jax.block_until_ready(y)

    assert y.shape == (batch, in_channels // 2, *output_size), y.shape
    assert bool(jnp.isfinite(y).all())

    # Relative-tolerance check vs. f32 reference (kernel uses bf16 MXU inputs, f32 accumulation).
    y_ref = upsample_reference(params, x, output_size)
    err = float(jnp.max(jnp.abs(y - y_ref)))
    mag = float(jnp.max(jnp.abs(y_ref))) + 1e-6
    assert err / mag < 2e-2, f"relative error {err / mag:.5f} (abs {err:.5f})"

    print("KERNEL_OK")
</pallas_src>

<mosaic_0001>
module attributes {stable_mosaic.version = 11 : i64} {
  func.func @_conv1x1_bn_lrelu_kernel(%arg0: i32, %arg1: i32, %arg2: memref<32x64xbf16, #tpu.memory_space<vmem>>, %arg3: memref<32x1xf32, #tpu.memory_space<vmem>>, %arg4: memref<1x64x256xf32, #tpu.memory_space<vmem>>, %arg5: memref<1x32x256xf32, #tpu.memory_space<vmem>>) attributes {dimension_semantics = [#tpu.dimension_semantics<parallel>, #tpu.dimension_semantics<parallel>], iteration_bounds = array<i64: 2, 1>, scalar_prefetch = 0 : i64, scratch_operands = 0 : i64, tpu.core_type = #tpu.core_type<tc>, window_params = [{pipeline_mode = #tpu.pipeline_mode<synchronous>, transform_indices = @transform_0, window_bounds = array<i64: 32, 64>}, {pipeline_mode = #tpu.pipeline_mode<synchronous>, transform_indices = @transform_1, window_bounds = array<i64: 32, 1>}, {transform_indices = @transform_2, window_bounds = array<i64: 1, 64, 256>}, {transform_indices = @transform_3, window_bounds = array<i64: 1, 32, 256>}]} {
    %c0 = arith.constant 0 : index
    %c0_0 = arith.constant 0 : index
    %c0_1 = arith.constant 0 : index
    %0 = vector.load %arg4[%c0, %c0_0, %c0_1] : memref<1x64x256xf32, #tpu.memory_space<vmem>>, vector<1x64x256xf32>
    %1 = vector.shape_cast %0 : vector<1x64x256xf32> to vector<64x256xf32>
    %2 = arith.truncf %1 : vector<64x256xf32> to vector<64x256xbf16>
    %c0_2 = arith.constant 0 : index
    %c0_3 = arith.constant 0 : index
    %3 = vector.load %arg2[%c0_2, %c0_3] : memref<32x64xbf16, #tpu.memory_space<vmem>>, vector<32x64xbf16>
    %cst = arith.constant dense<0.000000e+00> : vector<32x256xf32>
    %4 = tpu.matmul %3, %2, %cst {dimension_numbers = #tpu.dot_dimension_numbers<[1], [0], [0], [1], [0, 0, 1, 1], [], []>} : vector<32x64xbf16>, vector<64x256xbf16>, vector<32x256xf32> -> vector<32x256xf32>
    %c0_4 = arith.constant 0 : index
    %c0_5 = arith.constant 0 : index
    %5 = vector.load %arg3[%c0_4, %c0_5] : memref<32x1xf32, #tpu.memory_space<vmem>>, vector<32x1xf32>
    %6 = vector.broadcast %5 : vector<32x1xf32> to vector<32x256xf32>
    %7 = arith.addf %4, %6 : vector<32x256xf32>
    %cst_6 = arith.constant 0.000000e+00 : f32
    %8 = vector.broadcast %cst_6 : f32 to vector<32x256xf32>
    %9 = arith.cmpf oge, %7, %8 : vector<32x256xf32>
    %cst_7 = arith.constant 1.000000e-01 : f32
    %10 = vector.broadcast %cst_7 : f32 to vector<32x256xf32>
    %11 = arith.mulf %10, %7 : vector<32x256xf32>
    %12 = arith.select %9, %7, %11 : vector<32x256xi1>, vector<32x256xf32>
    %c0_8 = arith.constant 0 : index
    %c0_9 = arith.constant 0 : index
    %c0_10 = arith.constant 0 : index
    %13 = vector.load %arg5[%c0_8, %c0_9, %c0_10] : memref<1x32x256xf32, #tpu.memory_space<vmem>>, vector<1x32x256xf32>
    %14 = vector.shape_cast %13 : vector<1x32x256xf32> to vector<32x256xf32>
    %15 = vector.shape_cast %12 : vector<32x256xf32> to vector<1x32x256xf32>
    tpu.vector_store %arg5[%c0_8, %c0_9, %c0_10], %15 {strides = array<i32>} : memref<1x32x256xf32, #tpu.memory_space<vmem>>, vector<1x32x256xf32>,
    return
  }
  func.func @transform_0(%arg0: i32, %arg1: i32) -> (i32, i32) {
    %c0_i32 = arith.constant 0 : i32
    %c0_i32_0 = arith.constant 0 : i32
    %c0_i32_1 = arith.constant 0 : i32
    return %c0_i32, %c0_i32_0 : i32, i32
  }
  func.func @transform_1(%arg0: i32, %arg1: i32) -> (i32, i32) {
    %c0_i32 = arith.constant 0 : i32
    %c0_i32_0 = arith.constant 0 : i32
    %c0_i32_1 = arith.constant 0 : i32
    return %c0_i32, %c0_i32_0 : i32, i32
  }
  func.func @transform_2(%arg0: i32, %arg1: i32) -> (i32, i32, i32) {
    %c0_i32 = arith.constant 0 : i32
    %c0_i32_0 = arith.constant 0 : i32
    return %arg0, %c0_i32, %arg1 : i32, i32, i32
  }
  func.func @transform_3(%arg0: i32, %arg1: i32) -> (i32, i32, i32) {
    %c0_i32 = arith.constant 0 : i32
    %c0_i32_0 = arith.constant 0 : i32
    return %arg0, %c0_i32, %arg1 : i32, i32, i32
  }
}

</mosaic_0001>

<bundles_post_ra>
// kernel: upsample_forward.1
= control target key start
LH: loop header
LB: loop body
LE: loop exit
PB: predicated region body
PF: predicated region fallthrough
CT: control target
= control target key end

     0   :  { %s551_s12 = smov 0   ;;  %s553_s13 = smov 0   ;;  %s634_s0 = inlined_call_operand.vmem [shape: bf16[32,64], index: 0, kind: input, shape index: {}]   ;;  %s635_s1 = inlined_call_operand.vmem [shape: f32[32,1], index: 1, kind: input, shape index: {}]   ;;  %s636_s2 = inlined_call_operand.vmem [shape: f32[2,64,256], index: 2, kind: input, shape index: {}]   ;;  %s637_s3 = inlined_call_operand.vmem [shape: f32[2,32,256], index: 3, kind: output, shape index: {}]  }
   0x1   :  { %s555_s14 = smov 0  }
   0x2 LB: > { %s25_s15 = sadd.s32 1, %s524_s13  ;;  %p456_p0 = scmp.ge.s32.totalorder %s528_s14, 1  ;;  %s528_s14 = sphi %s555_s14, %s13_s14   ;;  %s524_s13 = sphi %s553_s13, %s639_s13   ;;  %s520_s12 = sphi %s551_s12, %s638_s12  }
   0x3   : > { %p27_p1 = scmp.ge.s32.totalorder %s25_s15, 2  ;;  %p158_p2 = scmp.lt.s32.totalorder %s528_s14, 3 }
   0x5   : > { %s641_s15 = smov (%p27_p1, %s25_s15), 0  ;;  %p159_p3 = pnand %p456_p0, %p158_p2 }
   0x6   : > { %p191_p4 = scmp.lt.s32.totalorder (!%p159_p3), %s520_s12, 1 }
   0x7   : > { %162 = sbr.rel (%p159_p3) target bundleno = 242 (0xf2), region = 32 }
   0xc   : > { %v530_v0 = vmov 0   ;;  %s643_s12 = smov (!%p191_p4, %s520_s12), 1  ;;  %v241_v1 = vld [vmem:[%s635_s1 + $0x10] sm:$0xff]  ;;  %v239_v2 = vld [vmem:[%s635_s1] sm:$0xff]  ;;  %v242_v3 = vld [vmem:[%s635_s1 + $0x18] sm:$0xff]  ;;  %vm273_vm0 = vcmask 523264  }
   0xd   : > { %312 = vmatprep.mubr.bf16.mxu0 %v530_v0  ;;  %322 = vmatprep.mubr.bf16.mxu1 %v530_v0  ;;  %s467_s20 = sshll.u32 %s643_s12, 7  ;;  %v240_v4 = vld [vmem:[%s635_s1 + $0x8] sm:$0xff]  ;;  %v504_v29 = vld [vmem:[%s634_s0] sm:$0xff]   ;;  %s468_s5 = sshll.u32 %s643_s12, 6 }
   0xe   : > { %503 = vset.pattern.permute.xlu1 %v530_v0  ;;  %502 = vset.pattern.permute.xlu0 %v530_v0  ;;  %s587_s27 = scalar_lea.vmem %s636_s2, %s467_s20  ;;  %v505_v30 = vld [vmem:[%s634_s0 + $0x8] sm:$0xff]   ;;  %s615_s8 = scalar_lea.vmem %s637_s3, %s468_s5 }
   0xf   : > { %255 = vperm.xlu1 %503, %v241_v1   ;;  %245 = vperm.xlu0 %502, %v239_v2   ;;  %v224_v5 = vld [vmem:[%s587_s27 + $0x68] sm:$0xff]  ;;  %v226_v6 = vld [vmem:[%s587_s27 + $0x78] sm:$0xff]  ;;  %v223_v7 = vld [vmem:[%s587_s27 + $0x60] sm:$0xff] }
  0x10   : > { %v234_v8 = vpack.c.bf16 %v226_v6, %v224_v5  ;;  %v225_v9 = vld [vmem:[%s587_s27 + $0x70] sm:$0xff]  ;;  %v220_v10 = vld [vmem:[%s587_s27 + $0x48] sm:$0xff]  ;;  %v222_v11 = vld [vmem:[%s587_s27 + $0x58] sm:$0xff] }
  0x11   : > { %v233_v12 = vpack.c.bf16 %v225_v9, %v223_v7  ;;  %v232_v13 = vpack.c.bf16 %v222_v11, %v220_v10  ;;  %v219_v14 = vld [vmem:[%s587_s27 + $0x40] sm:$0xff]  ;;  %v221_v15 = vld [vmem:[%s587_s27 + $0x50] sm:$0xff]  ;;  %v216_v16 = vld [vmem:[%s587_s27 + $0x28] sm:$0xff] }
  0x12   : > { %288 = vmatprep.subr.bf16.mxu0 %v234_v8  ;;  %469 = vmatprep.subr.bf16.mxu1 %v234_v8  ;;  %v218_v17 = vld [vmem:[%s587_s27 + $0x38] sm:$0xff]  ;;  %v231_v18 = vpack.c.bf16 %v221_v15, %v219_v14  ;;  %v215_v20 = vld [vmem:[%s587_s27 + $0x20] sm:$0xff]  ;;  %v217_v21 = vld [vmem:[%s587_s27 + $0x30] sm:$0xff] }
  0x13   : > { %260 = vperm.xlu1 %503, %v242_v3   ;;  %250 = vperm.xlu0 %502, %v240_v4   ;;  %v230_v19 = vpack.c.bf16 %v218_v17, %v216_v16  ;;  %v212_v22 = vld [vmem:[%s587_s27 + $0x8] sm:$0xff]  ;;  %v214_v23 = vld [vmem:[%s587_s27 + $0x18] sm:$0xff]  ;;  %v229_v24 = vpack.c.bf16 %v217_v21, %v215_v20  ;;  %v211_v26 = vld [vmem:[%s587_s27] sm:$0xff] }
  0x14   : > { %289 = vmatpush1.bf16.msra.mxu0 %v233_v12  ;;  %473 = vmatpush1.bf16.msra.mxu1 %v233_v12  ;;  %v228_v25 = vpack.c.bf16 %v214_v23, %v212_v22  ;;  %v213_v27 = vld [vmem:[%s587_s27 + $0x10] sm:$0xff] }
  0x15   : > { %290 = vmatprep.subr.bf16.mxu0 %v232_v13  ;;  %470 = vmatprep.subr.bf16.mxu1 %v232_v13  ;;  %v227_v28 = vpack.c.bf16 %v213_v27, %v211_v26 }
  0x18   : > { %291 = vmatpush1.bf16.msra.mxu0 %v231_v18  ;;  %474 = vmatpush1.bf16.msra.mxu1 %v231_v18 }
  0x19   : > { %292 = vmatprep.subr.bf16.mxu0 %v230_v19  ;;  %471 = vmatprep.subr.bf16.mxu1 %v230_v19 }
  0x1c   : > { %293 = vmatpush1.bf16.msra.mxu0 %v229_v24  ;;  %475 = vmatpush1.bf16.msra.mxu1 %v229_v24 }
  0x1d   : > { %294 = vmatprep.subr.bf16.mxu0 %v228_v25  ;;  %472 = vmatprep.subr.bf16.mxu1 %v228_v25 }
  0x20   : > { %295 = vmatpush1.bf16.msra.mxu0 %v227_v28  ;;  %476 = vmatpush1.bf16.msra.mxu1 %v227_v28 }
  0x23   : > { %463 = vmatmul.mubr.msk.bf16.vlgmr.msra.gmra.mxu0 %vm273_vm0, %v504_v29  ;;  %464 = vmatmul.mubr.msk.bf16.vlgmr.msra.gmra.mxu1 %vm273_vm0, %v505_v30 }
  0x8a   : > { %v256_v31 = vpop.permute.xlu1 %255  ;;  %v246_v32 = vpop.permute.xlu0 %245 }
  0x8e   : > { %v261_v41 = vpop.permute.xlu1 %260  ;;  %v251_v42 = vpop.permute.xlu0 %250 }
  0xe3   : > { %v314_v33 = vpop.f32.mrf.mxu0  ;;  %v324_v34 = vpop.f32.mrf.mxu1 }
  0xe4   : > { %v315_v35 = vadd.f32 %v314_v33, %v246_v32  ;;  %v325_v36 = vadd.f32 %v324_v34, %v256_v31 }
  0xe5   : > { %v316_v37 = vpop.f32.mrf.mxu0  ;;  %v326_v38 = vpop.f32.mrf.mxu1 }
  0xe6   : > { %vm333_vm1 = vcmp.ge.f32.partialorder %v315_v35, 0.0  ;;  %v341_v39 = vmul.f32 0.1, %v315_v35  ;;  %vm337_vm2 = vcmp.ge.f32.partialorder %v325_v36, 0.0  ;;  %v345_v40 = vmul.f32 0.1, %v325_v36 }
  0xe7   : > { %v317_v43 = vadd.f32 %v316_v37, %v246_v32  ;;  %v327_v44 = vadd.f32 %v326_v38, %v256_v31  ;;  %v318_v45 = vpop.f32.mrf.mxu0  ;;  %v328_v46 = vpop.f32.mrf.mxu1 }
  0xe8   : > { %v349_v47 = vsel %vm333_vm1, %v315_v35, %v341_v39  ;;  %v353_v48 = vsel %vm337_vm2, %v325_v36, %v345_v40  ;;  %v319_v49 = vadd.f32 %v318_v45, %v251_v42  ;;  %v329_v50 = vadd.f32 %v328_v46, %v261_v41 }
  0xe9   : > { %357 = vst [vmem:[%s615_s8] sm:$0xff] %v349_v47  ;;  %361 = vst [vmem:[%s615_s8 + $0x20] sm:$0xff] %v353_v48  ;;  %vm334_vm3 = vcmp.ge.f32.partialorder %v317_v43, 0.0  ;;  %v342_v51 = vmul.f32 0.1, %v317_v43  ;;  %vm338_vm4 = vcmp.ge.f32.partialorder %v327_v44, 0.0  ;;  %v320_v53 = vpop.f32.mrf.mxu0  ;;  %v330_v54 = vpop.f32.mrf.mxu1 }
  0xea   : > { %v346_v52 = vmul.f32 0.1, %v327_v44  ;;  %vm335_vm5 = vcmp.ge.f32.partialorder %v319_v49, 0.0  ;;  %v343_v55 = vmul.f32 0.1, %v319_v49  ;;  %vm339_vm6 = vcmp.ge.f32.partialorder %v329_v50, 0.0 }
  0xeb   : > { %v347_v56 = vmul.f32 0.1, %v329_v50  ;;  %v350_v57 = vsel %vm334_vm3, %v317_v43, %v342_v51  ;;  %v321_v59 = vadd.f32 %v320_v53, %v251_v42  ;;  %v331_v60 = vadd.f32 %v330_v54, %v261_v41 }
  0xec   : > { %v354_v58 = vsel %vm338_vm4, %v327_v44, %v346_v52  ;;  %358 = vst [vmem:[%s615_s8 + $0x8] sm:$0xff] %v350_v57  ;;  %v351_v61 = vsel %vm335_vm5, %v319_v49, %v343_v55 }
  0xed   : > { %362 = vst [vmem:[%s615_s8 + $0x28] sm:$0xff] %v354_v58  ;;  %v355_v62 = vsel %vm339_vm6, %v329_v50, %v347_v56  ;;  %359 = vst [vmem:[%s615_s8 + $0x10] sm:$0xff] %v351_v61  ;;  %vm336_vm7 = vcmp.ge.f32.partialorder %v321_v59, 0.0  ;;  %v344_v63 = vmul.f32 0.1, %v321_v59  ;;  %vm340_vm8 = vcmp.ge.f32.partialorder %v331_v60, 0.0 }
  0xee   : > { %363 = vst [vmem:[%s615_s8 + $0x30] sm:$0xff] %v355_v62  ;;  %v348_v0 = vmul.f32 0.1, %v331_v60 }
  0xef   : > { %v352_v1 = vsel %vm336_vm7, %v321_v59, %v344_v63 }
  0xf0   : > { %v356_v2 = vsel %vm340_vm8, %v331_v60, %v348_v0  ;;  %360 = vst [vmem:[%s615_s8 + $0x18] sm:$0xff] %v352_v1 }
  0xf1   : > { %364 = vst [vmem:[%s615_s8 + $0x38] sm:$0xff] %v356_v2 }
  0xf2 PF: > { %s13_s14 = sadd.s32 1, %s528_s14   ;;  %s638_s12 = smov %s524_s13 }
  0xf3   : > { %p10_p5 = scmp.ge.s32.totalorder %s13_s14, 4   ;;  %s639_s13 = smov %s641_s15 }
  0xf5   :  { %12 = sbr.rel (!%p10_p5) target bundleno = 2 (0x2), region = 62 }

</bundles_post_ra>
